<compile_context>
chip_gen: v7x
topology: tpu7x:2x2x1
jax: 0.10.0
libtpu: 0.0.40
codegen_flags: <defaults>
</compile_context>

<pallas_src>
import jax
import jax.numpy as jnp
from jax.experimental import pallas as pl
from jax.experimental.pallas import tpu as pltpu

INPUT_SIZE = 784
HIDDEN_SIZE = 500
NUM_CLASSES = 10

H_PAD = 512    # 500 -> next multiple of 128 (fc1 out / fc2 contraction dim)
N_PAD = 128    # 10  -> lane-dense output slab (sliced back to 10 in wrapper)
TB_MAX = 512   # max batch tile: multiple of 256 (v6e/v7x MXU) and 128 (v5e)


def _round_up(n, m):
    return ((n + m - 1) // m) * m


def _choose_tb(batch):
    """Pick the batch tile.

    - tiny batches: tile == full batch (block equal to the array is always a
      legal block shape, even when not a multiple of 8).
    - mid batches: aim for ~2 grid steps (both v7x TensorCores busy), rounded
      up to the 8-row f32 sublane.
    - large batches: TB_MAX to amortize the ~0.35 us/step pipeline overhead.
    """
    if batch <= 16:
        return batch
    if batch <= 2 * TB_MAX:
        return min(TB_MAX, _round_up(-(-batch // 2), 8))
    return TB_MAX


def _mlp_kernel(x_ref, w1_ref, b1_ref, w2_ref, o_ref):
    # fc1: (tb, 784) @ (784, 512) on the MXU, bf16 inputs, f32 accumulation.
    x = x_ref[...].astype(jnp.bfloat16)
    h = jnp.dot(x, w1_ref[...], preferred_element_type=jnp.float32)
    h = jnp.maximum(h + b1_ref[...], 0.0)          # bias + ReLU in f32 (VPU)
    # fc2 (no bias): (tb, 512) @ (512, 128) -> lane-dense f32 output slab.
    o_ref[...] = jnp.dot(
        h.astype(jnp.bfloat16), w2_ref[...], preferred_element_type=jnp.float32
    ).astype(o_ref.dtype)


def prepare_params(w1, b1, w2):
    """One-time parameter prep (hoisted out of the per-call path):
    zero-pad hidden/class dims to 128-multiples and cast weights to bf16.
    Padding is numerically exact (padded rows/cols hit zero weights)."""
    w1_p = jnp.zeros((INPUT_SIZE, H_PAD), jnp.bfloat16)
    w1_p = w1_p.at[:, :HIDDEN_SIZE].set(w1.astype(jnp.bfloat16))
    b1_p = jnp.zeros((1, H_PAD), jnp.float32)
    b1_p = b1_p.at[:, :HIDDEN_SIZE].set(
        jnp.reshape(b1, (1, HIDDEN_SIZE)).astype(jnp.float32))
    w2_p = jnp.zeros((H_PAD, N_PAD), jnp.bfloat16)
    w2_p = w2_p.at[:HIDDEN_SIZE, :NUM_CLASSES].set(w2.astype(jnp.bfloat16))
    return w1_p, b1_p, w2_p


def neural_net_forward(x, w1_p, b1_p, w2_p, *, tb=None):
    """x: (B, 784) f32 (unpadded); w1_p/b1_p/w2_p from prepare_params()."""
    B = x.shape[0]
    if tb is None:
        tb = _choose_tb(B)
    num_tiles = pl.cdiv(B, tb)

    flops = 2 * B * (INPUT_SIZE * H_PAD + H_PAD * N_PAD)
    bytes_accessed = (x.size * x.dtype.itemsize          # x streamed once
                      + w1_p.size * 2 + w2_p.size * 2    # bf16 weights
                      + b1_p.size * 4                    # f32 bias
                      + B * N_PAD * 4)                   # f32 output slab

    out_p = pl.pallas_call(
        _mlp_kernel,
        out_shape=jax.ShapeDtypeStruct((B, N_PAD), jnp.float32),
        grid_spec=pl.GridSpec(
            grid=(num_tiles,),
            in_specs=[
                # x: one (tb, 784) tile per grid step (784 == full dim, legal);
                # partial last block is masked by Pallas.
                pl.BlockSpec((tb, INPUT_SIZE), lambda i: (i, 0)),
                # weights/bias: constant block index -> VMEM-resident, one DMA.
                pl.BlockSpec((INPUT_SIZE, H_PAD), lambda i: (0, 0)),
                pl.BlockSpec((1, H_PAD), lambda i: (0, 0)),
                pl.BlockSpec((H_PAD, N_PAD), lambda i: (0, 0)),
            ],
            out_specs=pl.BlockSpec((tb, N_PAD), lambda i: (i, 0)),
        ),
        compiler_params=pltpu.CompilerParams(
            # batch tiles are independent -> shard across v7x's 2 TensorCores
            dimension_semantics=("parallel",),
        ),
        cost_estimate=pl.CostEstimate(
            flops=flops, transcendentals=0, bytes_accessed=bytes_accessed
        ),
    )(x, w1_p, b1_p, w2_p)

    # Slice away only the lane padding of the class dim (no batch padding).
    return out_p[:, :NUM_CLASSES]


def init_params(key):
    """PyTorch nn.Linear default init: U[-1/sqrt(fan_in), +1/sqrt(fan_in)]."""
    k1, k2, k3 = jax.random.split(key, 3)
    bound1 = 1.0 / (INPUT_SIZE ** 0.5)
    bound2 = 1.0 / (HIDDEN_SIZE ** 0.5)
    w1 = jax.random.uniform(k1, (INPUT_SIZE, HIDDEN_SIZE), jnp.float32, -bound1, bound1)
    b1 = jax.random.uniform(k2, (1, HIDDEN_SIZE), jnp.float32, -bound1, bound1)
    w2 = jax.random.uniform(k3, (HIDDEN_SIZE, NUM_CLASSES), jnp.float32, -bound2, bound2)
    return w1, b1, w2


def reference_forward_f32(x, w1, b1, w2):
    h = jnp.maximum(x @ w1 + jnp.reshape(b1, (1, -1)), 0.0)
    return h @ w2


def reference_forward_bf16(x, w1, b1, w2):
    """Mirrors the kernel numerics: bf16 matmul inputs, f32 accumulation."""
    h = jnp.dot(x.astype(jnp.bfloat16), w1.astype(jnp.bfloat16),
                preferred_element_type=jnp.float32)
    h = jnp.maximum(h + jnp.reshape(b1, (1, -1)).astype(jnp.float32), 0.0)
    return jnp.dot(h.astype(jnp.bfloat16), w2.astype(jnp.bfloat16),
                   preferred_element_type=jnp.float32)


if __name__ == "__main__":
    key = jax.random.PRNGKey(0)
    kx, kp = jax.random.split(key)

    batch = 8
    x = jax.random.normal(kx, (batch, INPUT_SIZE), jnp.float32)
    w1, b1, w2 = init_params(kp)
    w1_p, b1_p, w2_p = prepare_params(w1, b1, w2)   # one-time prep

    out = neural_net_forward(x, w1_p, b1_p, w2_p)
    out = jax.block_until_ready(out)

    assert out.shape == (batch, NUM_CLASSES)
    # Tight check against a reference that uses the same bf16/f32 numerics.
    ref_bf16 = reference_forward_bf16(x, w1, b1, w2)
    assert jnp.allclose(out, ref_bf16, atol=1e-3, rtol=1e-3)
    # Loose sanity check against the pure-f32 PyTorch-equivalent math
    # (bf16 MXU inputs cost ~1e-3 absolute error at these magnitudes).
    ref_f32 = reference_forward_f32(x, w1, b1, w2)
    assert jnp.allclose(out, ref_f32, atol=5e-2, rtol=5e-2)

    print("KERNEL_OK")
</pallas_src>

<mosaic_0001>
module attributes {stable_mosaic.version = 11 : i64} {
  func.func @_mlp_kernel(%arg0: i32, %arg1: memref<8x784xf32, #tpu.memory_space<vmem>>, %arg2: memref<784x512xbf16, #tpu.memory_space<vmem>>, %arg3: memref<1x512xf32, #tpu.memory_space<vmem>>, %arg4: memref<512x128xbf16, #tpu.memory_space<vmem>>, %arg5: memref<8x128xf32, #tpu.memory_space<vmem>>) attributes {dimension_semantics = [#tpu.dimension_semantics<parallel>], iteration_bounds = array<i64: 1>, scalar_prefetch = 0 : i64, scratch_operands = 0 : i64, tpu.core_type = #tpu.core_type<tc>, window_params = [{transform_indices = @transform_0, window_bounds = array<i64: 8, 784>}, {pipeline_mode = #tpu.pipeline_mode<synchronous>, transform_indices = @transform_1, window_bounds = array<i64: 784, 512>}, {pipeline_mode = #tpu.pipeline_mode<synchronous>, transform_indices = @transform_2, window_bounds = array<i64: 1, 512>}, {pipeline_mode = #tpu.pipeline_mode<synchronous>, transform_indices = @transform_3, window_bounds = array<i64: 512, 128>}, {transform_indices = @transform_4, window_bounds = array<i64: 8, 128>}]} {
    %c0 = arith.constant 0 : index
    %c0_0 = arith.constant 0 : index
    %0 = vector.load %arg1[%c0, %c0_0] : memref<8x784xf32, #tpu.memory_space<vmem>>, vector<8x784xf32>
    %1 = arith.truncf %0 : vector<8x784xf32> to vector<8x784xbf16>
    %c0_1 = arith.constant 0 : index
    %c0_2 = arith.constant 0 : index
    %2 = vector.load %arg2[%c0_1, %c0_2] : memref<784x512xbf16, #tpu.memory_space<vmem>>, vector<784x512xbf16>
    %cst = arith.constant dense<0.000000e+00> : vector<8x512xf32>
    %3 = tpu.matmul %1, %2, %cst {dimension_numbers = #tpu.dot_dimension_numbers<[1], [0], [0], [1], [0, 0, 1, 1], [], []>} : vector<8x784xbf16>, vector<784x512xbf16>, vector<8x512xf32> -> vector<8x512xf32>
    %c0_3 = arith.constant 0 : index
    %c0_4 = arith.constant 0 : index
    %4 = vector.load %arg3[%c0_3, %c0_4] : memref<1x512xf32, #tpu.memory_space<vmem>>, vector<1x512xf32>
    %5 = vector.broadcast %4 : vector<1x512xf32> to vector<8x512xf32>
    %6 = arith.addf %3, %5 : vector<8x512xf32>
    %cst_5 = arith.constant 0.000000e+00 : f32
    %7 = vector.broadcast %cst_5 : f32 to vector<8x512xf32>
    %8 = arith.maximumf %6, %7 : vector<8x512xf32>
    %9 = arith.truncf %8 : vector<8x512xf32> to vector<8x512xbf16>
    %c0_6 = arith.constant 0 : index
    %c0_7 = arith.constant 0 : index
    %10 = vector.load %arg4[%c0_6, %c0_7] : memref<512x128xbf16, #tpu.memory_space<vmem>>, vector<512x128xbf16>
    %cst_8 = arith.constant dense<0.000000e+00> : vector<8x128xf32>
    %11 = tpu.matmul %9, %10, %cst_8 {dimension_numbers = #tpu.dot_dimension_numbers<[1], [0], [0], [1], [0, 0, 1, 1], [], []>} : vector<8x512xbf16>, vector<512x128xbf16>, vector<8x128xf32> -> vector<8x128xf32>
    %c0_9 = arith.constant 0 : index
    %c0_10 = arith.constant 0 : index
    %12 = vector.load %arg5[%c0_9, %c0_10] : memref<8x128xf32, #tpu.memory_space<vmem>>, vector<8x128xf32>
    tpu.vector_store %arg5[%c0_9, %c0_10], %11 {strides = array<i32>} : memref<8x128xf32, #tpu.memory_space<vmem>>, vector<8x128xf32>,
    return
  }
  func.func @transform_0(%arg0: i32) -> (i32, i32) {
    %c0_i32 = arith.constant 0 : i32
    %c0_i32_0 = arith.constant 0 : i32
    return %arg0, %c0_i32 : i32, i32
  }
  func.func @transform_1(%arg0: i32) -> (i32, i32) {
    %c0_i32 = arith.constant 0 : i32
    %c0_i32_0 = arith.constant 0 : i32
    %c0_i32_1 = arith.constant 0 : i32
    return %c0_i32, %c0_i32_0 : i32, i32
  }
  func.func @transform_2(%arg0: i32) -> (i32, i32) {
    %c0_i32 = arith.constant 0 : i32
    %c0_i32_0 = arith.constant 0 : i32
    %c0_i32_1 = arith.constant 0 : i32
    return %c0_i32, %c0_i32_0 : i32, i32
  }
  func.func @transform_3(%arg0: i32) -> (i32, i32) {
    %c0_i32 = arith.constant 0 : i32
    %c0_i32_0 = arith.constant 0 : i32
    %c0_i32_1 = arith.constant 0 : i32
    return %c0_i32, %c0_i32_0 : i32, i32
  }
  func.func @transform_4(%arg0: i32) -> (i32, i32) {
    %c0_i32 = arith.constant 0 : i32
    %c0_i32_0 = arith.constant 0 : i32
    return %arg0, %c0_i32 : i32, i32
  }
}

</mosaic_0001>

<bundles_post_ra>
// kernel: tpu_custom_call.1
= control target key start
LH: loop header
LB: loop body
LE: loop exit
PB: predicated region body
PF: predicated region fallthrough
CT: control target
= control target key end

     0   :  { %9 = vsyncpa [#allocation3], 0  ;;  %s2779_s0 = inlined_call_operand.hbm [shape: f32[8,784], index: 0, kind: input, shape index: {}]   ;;  %s2780_s1 = inlined_call_operand.hbm [shape: bf16[784,512], index: 1, kind: input, shape index: {}]   ;;  %s2781_s2 = inlined_call_operand.vmem [shape: f32[1,512], index: 2, kind: input, shape index: {}]   ;;  %s2782_s3 = inlined_call_operand.hbm [shape: bf16[512,128], index: 3, kind: input, shape index: {}]   ;;  %s2783_s4 = inlined_call_operand.hbm [shape: f32[8,128], index: 4, kind: output, shape index: {}]  }
   0x1   :  { %10 = vsyncpa [#allocation6], 0 }
   0x2   :  { %11 = vsyncpa [#allocation4], 0  ;;  %s2694_s15 = smov [#allocation5]   ;;  %s2600_s19 = scalar_lea.hbm %s2780_s1, 25088 }
   0x3   :  { %s27_s16 = sshll.u32 %s2694_s15, 4  ;;  %p2601_p0 = scmp.ne.s32.totalorder %s2780_s1, %s2600_s19  ;;  %s28_s16 = int_to_ptr.vmem [resolvable:$true] %s27_s16 }
   0x4   :  { %p2604_p1 = scmp.lt.u32.totalorder %s2600_s19, %s2780_s1 }
   0x6   :  { %p2606_p2 = pnand %p2604_p1, %p2601_p0 }
   0x8   :  { %2609 = shalt.err (!%p2606_p2)
}
   0x9   :  { %s2610_s24 = scalar_lea.vmem %s28_s16, 25088  ;;  %p2615_p4 = scmp.lt.s32.totalorder %s28_s16, %s28_s16 }
   0xa   :  { %p2611_p3 = scmp.ne.s32.totalorder %s28_s16, %s2610_s24  ;;  %p2616_p5 = scmp.lt.s32.totalorder %s2610_s24, %s2610_s24 }
   0xc   :  { %p2617_p6 = por %p2616_p5, %p2615_p4 }
   0xe   :  { %p2618_p7 = pnand %p2617_p6, %p2611_p3 }
  0x10   :  { %2621 = shalt.err (!%p2618_p7)
}
  0x11   :  { %s2695_s25 = smov 256   ;;  %s2696_s26 = smov 16  }
  0x12   :  { %33 = dma.hbm_to_vmem [thread:$0]  %s2780_s1, 25088, %s28_s16, [#allocation6], %s2695_s25, %s2695_s25, %s2696_s26  }
  0x13   :  { %s2697_s29 = smov [#allocation2]   ;;  %s2698_s5 = smov [#allocation7]  }
  0x14   :  { %s18_s30 = sshll.u32 %s2697_s29, 4  ;;  %s41_s6 = sshll.u32 %s2698_s5, 4  ;;  %s19_s30 = int_to_ptr.vmem [resolvable:$true] %s18_s30  ;;  %s42_s6 = int_to_ptr.vmem [resolvable:$true] %s41_s6 }
  0x15   :  { %s2622_s9 = scalar_lea.hbm %s2779_s0, 896 }
  0x16   :  { %p2623_p8 = scmp.ne.s32.totalorder %s2779_s0, %s2622_s9  ;;  %p2626_p9 = scmp.lt.u32.totalorder %s2622_s9, %s2779_s0 }
  0x18   :  { %p2628_p10 = pnand %p2626_p9, %p2623_p8 }
  0x1a   :  { %2631 = shalt.err (!%p2628_p10)
}
  0x1b   :  { %s2632_s1 = scalar_lea.vmem %s19_s30, 896  ;;  %p2637_p12 = scmp.lt.s32.totalorder %s19_s30, %s19_s30 }
  0x1c   :  { %p2633_p11 = scmp.ne.s32.totalorder %s19_s30, %s2632_s1  ;;  %p2638_p13 = scmp.lt.s32.totalorder %s2632_s1, %s2632_s1 }
  0x1e   :  { %p2639_p0 = por %p2638_p13, %p2637_p12 }
  0x20   :  { %p2640_p1 = pnand %p2639_p0, %p2633_p11 }
  0x22   :  { %2643 = shalt.err (!%p2640_p1)
}
  0x23   :  { %21 = dma.hbm_to_vmem [thread:$0]  %s2779_s0, 896, %s19_s30, [#allocation3]  }
  0x24   :  { %s2644_s18 = scalar_lea.hbm %s2782_s3, 4096 }
  0x25   :  { %p2645_p2 = scmp.ne.s32.totalorder %s2782_s3, %s2644_s18  ;;  %p2648_p3 = scmp.lt.u32.totalorder %s2644_s18, %s2782_s3 }
  0x27   :  { %p2650_p4 = pnand %p2648_p3, %p2645_p2 }
  0x29   :  { %2653 = shalt.err (!%p2650_p4)
}
  0x2a   :  { %s2654_s23 = scalar_lea.vmem %s42_s6, 4096  ;;  %p2659_p6 = scmp.lt.s32.totalorder %s42_s6, %s42_s6 }
  0x2b   :  { %p2655_p5 = scmp.ne.s32.totalorder %s42_s6, %s2654_s23  ;;  %p2660_p7 = scmp.lt.s32.totalorder %s2654_s23, %s2654_s23 }
  0x2d   :  { %p2661_p8 = por %p2660_p7, %p2659_p6 }
  0x2f   :  { %p2662_p9 = pnand %p2661_p8, %p2655_p5 }
  0x31   :  { %2665 = shalt.err (!%p2662_p9)
}
  0x32   :  { %s2699_s0 = smov 64   ;;  %s2700_s24 = smov 4  }
  0x33   :  { %47 = dma.hbm_to_vmem [thread:$0]  %s2782_s3, 4096, %s42_s6, [#allocation6], %s2699_s0, %s2699_s0, %s2700_s24  }
  0x34   :  { %2688 = dma.done.wait [#allocation3], 896  }
  0x35   :  { %2689 = vsyncadd [#allocation3], 4294966400 }
  0x36   :  { %2690 = dma.done.wait [#allocation6], 29184  }
  0x37   :  { %2691 = vsyncadd [#allocation6], 4294938112  ;;  %v2274_v0 = vld [vmem:[#allocation5 + $0x4] ss:$16 sps:$4 sm:$0xff]   ;;  %v2276_v1 = vld [vmem:[#allocation5 + $0xc] ss:$16 sps:$4 sm:$0xff]  }
  0x38   :  { %1274 = vmatprep.subr.bf16.mxu0 %v2274_v0  ;;  %v2278_v2 = vld [vmem:[#allocation5] ss:$16 sps:$4 sm:$0xff]   ;;  %v2279_v3 = vld [vmem:[#allocation5 + $0x8] ss:$16 sps:$4 sm:$0xff]   ;;  %1438 = vmatprep.subr.bf16.mxu1 %v2276_v1  ;;  %v2280_v4 = vld [vmem:[#allocation5 + $0x24] ss:$16 sps:$4 sm:$0xff]  }
  0x39   :  { %1275 = vmatpush1.bf16.msra.mxu0 %v2278_v2  ;;  %1439 = vmatpush1.bf16.msra.mxu1 %v2279_v3  ;;  %v2282_v5 = vld [vmem:[#allocation5 + $0x2c] ss:$16 sps:$4 sm:$0xff]   ;;  %v2284_v6 = vld [vmem:[#allocation5 + $0x20] ss:$16 sps:$4 sm:$0xff]   ;;  %v2285_v7 = vld [vmem:[#allocation5 + $0x28] ss:$16 sps:$4 sm:$0xff]  }
  0x3a   :  { %1276 = vmatprep.subr.bf16.mxu0 %v2280_v4  ;;  %1440 = vmatprep.subr.bf16.mxu1 %v2282_v5  ;;  %v2286_v8 = vld [vmem:[#allocation5 + $0x44] ss:$16 sps:$4 sm:$0xff]   ;;  %v2288_v9 = vld [vmem:[#allocation5 + $0x4c] ss:$16 sps:$4 sm:$0xff]   ;;  %v2290_v10 = vld [vmem:[#allocation5 + $0x40] ss:$16 sps:$4 sm:$0xff]  }
  0x3b   :  { %v2291_v11 = vld [vmem:[#allocation5 + $0x48] ss:$16 sps:$4 sm:$0xff]   ;;  %v2292_v12 = vld [vmem:[#allocation5 + $0x64] ss:$16 sps:$4 sm:$0xff]   ;;  %v2294_v13 = vld [vmem:[#allocation5 + $0x6c] ss:$16 sps:$4 sm:$0xff]  }
  0x3c   :  { %v2296_v14 = vld [vmem:[#allocation5 + $0x60] ss:$16 sps:$4 sm:$0xff]   ;;  %v2297_v15 = vld [vmem:[#allocation5 + $0x68] ss:$16 sps:$4 sm:$0xff]   ;;  %v2298_v16 = vld [vmem:[#allocation5 + $0x84] ss:$16 sps:$4 sm:$0xff]  }
  0x3d   :  { %1277 = vmatpush1.bf16.msra.mxu0 %v2284_v6  ;;  %1441 = vmatpush1.bf16.msra.mxu1 %v2285_v7  ;;  %v2300_v17 = vld [vmem:[#allocation5 + $0x8c] ss:$16 sps:$4 sm:$0xff]   ;;  %v2302_v18 = vld [vmem:[#allocation5 + $0x80] ss:$16 sps:$4 sm:$0xff]   ;;  %v2303_v19 = vld [vmem:[#allocation5 + $0x88] ss:$16 sps:$4 sm:$0xff]  }
  0x3e   :  { %1278 = vmatprep.subr.bf16.mxu0 %v2286_v8  ;;  %1442 = vmatprep.subr.bf16.mxu1 %v2288_v9  ;;  %v2304_v20 = vld [vmem:[#allocation5 + $0xa4] ss:$16 sps:$4 sm:$0xff]   ;;  %v2306_v21 = vld [vmem:[#allocation5 + $0xac] ss:$16 sps:$4 sm:$0xff]   ;;  %v2308_v22 = vld [vmem:[#allocation5 + $0xa0] ss:$16 sps:$4 sm:$0xff]  }
  0x3f   :  { %v2309_v23 = vld [vmem:[#allocation5 + $0xa8] ss:$16 sps:$4 sm:$0xff]   ;;  %v2310_v24 = vld [vmem:[#allocation5 + $0xc4] ss:$16 sps:$4 sm:$0xff]   ;;  %v2312_v25 = vld [vmem:[#allocation5 + $0xcc] ss:$16 sps:$4 sm:$0xff]  }
  0x40   :  { %v2314_v26 = vld [vmem:[#allocation5 + $0xc0] ss:$16 sps:$4 sm:$0xff]   ;;  %v2315_v27 = vld [vmem:[#allocation5 + $0xc8] ss:$16 sps:$4 sm:$0xff]   ;;  %v2316_v28 = vld [vmem:[#allocation5 + $0xe4] ss:$16 sps:$4 sm:$0xff]  }
  0x41   :  { %1279 = vmatpush1.bf16.msra.mxu0 %v2290_v10  ;;  %1443 = vmatpush1.bf16.msra.mxu1 %v2291_v11  ;;  %v2318_v29 = vld [vmem:[#allocation5 + $0xec] ss:$16 sps:$4 sm:$0xff]   ;;  %v2320_v30 = vld [vmem:[#allocation5 + $0xe0] ss:$16 sps:$4 sm:$0xff]   ;;  %v2321_v31 = vld [vmem:[#allocation5 + $0xe8] ss:$16 sps:$4 sm:$0xff]  }
  0x42   :  { %1280 = vmatprep.subr.bf16.mxu0 %v2292_v12  ;;  %1444 = vmatprep.subr.bf16.mxu1 %v2294_v13  ;;  %v2322_v32 = vld [vmem:[#allocation5 + $0x104] ss:$16 sps:$4 sm:$0xff]   ;;  %v2324_v33 = vld [vmem:[#allocation5 + $0x10c] ss:$16 sps:$4 sm:$0xff]   ;;  %v2326_v34 = vld [vmem:[#allocation5 + $0x100] ss:$16 sps:$4 sm:$0xff]  }
  0x43   :  { %v2327_v35 = vld [vmem:[#allocation5 + $0x108] ss:$16 sps:$4 sm:$0xff]   ;;  %v2328_v36 = vld [vmem:[#allocation5 + $0x124] ss:$16 sps:$4 sm:$0xff]   ;;  %v2330_v37 = vld [vmem:[#allocation5 + $0x12c] ss:$16 sps:$4 sm:$0xff]  }
  0x44   :  { %v2332_v38 = vld [vmem:[#allocation5 + $0x120] ss:$16 sps:$4 sm:$0xff]   ;;  %v2333_v39 = vld [vmem:[#allocation5 + $0x128] ss:$16 sps:$4 sm:$0xff]   ;;  %v2334_v40 = vld [vmem:[#allocation5 + $0x144] ss:$16 sps:$4 sm:$0xff]  }
  0x45   :  { %1281 = vmatpush1.bf16.msra.mxu0 %v2296_v14  ;;  %1445 = vmatpush1.bf16.msra.mxu1 %v2297_v15  ;;  %v2336_v41 = vld [vmem:[#allocation5 + $0x14c] ss:$16 sps:$4 sm:$0xff]   ;;  %v2338_v42 = vld [vmem:[#allocation5 + $0x140] ss:$16 sps:$4 sm:$0xff]   ;;  %v2339_v43 = vld [vmem:[#allocation5 + $0x148] ss:$16 sps:$4 sm:$0xff]  }
  0x46   :  { %1282 = vmatprep.subr.bf16.mxu0 %v2298_v16  ;;  %1446 = vmatprep.subr.bf16.mxu1 %v2300_v17  ;;  %v2340_v44 = vld [vmem:[#allocation5 + $0x164] ss:$16 sps:$4 sm:$0xff]   ;;  %v2342_v45 = vld [vmem:[#allocation5 + $0x16c] ss:$16 sps:$4 sm:$0xff]   ;;  %v2344_v47 = vld [vmem:[#allocation5 + $0x160] ss:$16 sps:$4 sm:$0xff]  }
  0x47   :  { %v59_v46 = vld [vmem:[#allocation2 + $0x8] sm:$0xff]  ;;  %v2345_v49 = vld [vmem:[#allocation5 + $0x168] ss:$16 sps:$4 sm:$0xff]   ;;  %v2348_v51 = vld [vmem:[#allocation5 + $0x18c] ss:$16 sps:$4 sm:$0xff]   ;;  %vm1270_vm0 = vcmask 130048  }
  0x48   :  { %v66_v48 = vpack.c.bf16 %v59_v46, %v59_v46  ;;  %v2346_v50 = vld [vmem:[#allocation5 + $0x184] ss:$16 sps:$4 sm:$0xff]   ;;  %v2350_v52 = vld [vmem:[#allocation5 + $0x180] ss:$16 sps:$4 sm:$0xff]   ;;  %v2351_v53 = vld [vmem:[#allocation5 + $0x188] ss:$16 sps:$4 sm:$0xff]  }
  0x49   :  { %1283 = vmatpush1.bf16.msra.mxu0 %v2302_v18  ;;  %1447 = vmatpush1.bf16.msra.mxu1 %v2303_v19  ;;  %v2352_v54 = vld [vmem:[#allocation5 + $0x1a4] ss:$16 sps:$4 sm:$0xff]   ;;  %v2354_v55 = vld [vmem:[#allocation5 + $0x1ac] ss:$16 sps:$4 sm:$0xff]   ;;  %v2356_v56 = vld [vmem:[#allocation5 + $0x1a0] ss:$16 sps:$4 sm:$0xff]  }
  0x4a   :  { %1284 = vmatprep.subr.bf16.mxu0 %v2304_v20  ;;  %1448 = vmatprep.subr.bf16.mxu1 %v2306_v21  ;;  %v2357_v57 = vld [vmem:[#allocation5 + $0x1a8] ss:$16 sps:$4 sm:$0xff]   ;;  %v2358_v58 = vld [vmem:[#allocation5 + $0x1c4] ss:$16 sps:$4 sm:$0xff]   ;;  %v2360_v59 = vld [vmem:[#allocation5 + $0x1cc] ss:$16 sps:$4 sm:$0xff]  }
  0x4b   :  { %1306 = vmatprep.mubr.bf16.mxu0 %v66_v48  ;;  %1470 = vmatprep.mubr.bf16.mxu1 %v66_v48  ;;  %v2362_v60 = vld [vmem:[#allocation5 + $0x1c0] ss:$16 sps:$4 sm:$0xff]   ;;  %v2363_v61 = vld [vmem:[#allocation5 + $0x1c8] ss:$16 sps:$4 sm:$0xff]   ;;  %v2364_v62 = vld [vmem:[#allocation5 + $0x1e4] ss:$16 sps:$4 sm:$0xff]  }
  0x4c   :  { %v2366_v63 = vld [vmem:[#allocation5 + $0x1ec] ss:$16 sps:$4 sm:$0xff]   ;;  %v2368_v0 = vld [vmem:[#allocation5 + $0x1e0] ss:$16 sps:$4 sm:$0xff]   ;;  %v2369_v1 = vld [vmem:[#allocation5 + $0x1e8] ss:$16 sps:$4 sm:$0xff]  }
  0x4d   :  { %1285 = vmatpush1.bf16.msra.mxu0 %v2308_v22  ;;  %1449 = vmatpush1.bf16.msra.mxu1 %v2309_v23  ;;  %v58_v2 = vld [vmem:[#allocation2] sm:$0xff]  ;;  %v2372_v3 = vld [vmem:[#allocation5 + $0x204] ss:$16 sps:$4 sm:$0xff]   ;;  %v2370_v6 = vld [vmem:[#allocation5 + $0x200] ss:$16 sps:$4 sm:$0xff]  }
  0x4e   :  { %1286 = vmatprep.subr.bf16.mxu0 %v2310_v24  ;;  %1450 = vmatprep.subr.bf16.mxu1 %v2312_v25  ;;  %v2375_v4 = vld [vmem:[#allocation5 + $0x20c] ss:$16 sps:$4 sm:$0xff]   ;;  %v65_v5 = vpack.c.bf16 %v58_v2, %v58_v2  ;;  %v2373_v7 = vld [vmem:[#allocation5 + $0x208] ss:$16 sps:$4 sm:$0xff]   ;;  %v2378_v8 = vld [vmem:[#allocation5 + $0x224] ss:$16 sps:$4 sm:$0xff]  }
  0x4f   :  { %v2381_v9 = vld [vmem:[#allocation5 + $0x22c] ss:$16 sps:$4 sm:$0xff]   ;;  %v2376_v10 = vld [vmem:[#allocation5 + $0x220] ss:$16 sps:$4 sm:$0xff]   ;;  %v2379_v11 = vld [vmem:[#allocation5 + $0x228] ss:$16 sps:$4 sm:$0xff]  }
  0x50   :  { %v2384_v12 = vld [vmem:[#allocation5 + $0x244] ss:$16 sps:$4 sm:$0xff]   ;;  %v2387_v13 = vld [vmem:[#allocation5 + $0x24c] ss:$16 sps:$4 sm:$0xff]   ;;  %v2382_v14 = vld [vmem:[#allocation5 + $0x240] ss:$16 sps:$4 sm:$0xff]  }
  0x51   :  { %1287 = vmatpush1.bf16.msra.mxu0 %v2314_v26  ;;  %1451 = vmatpush1.bf16.msra.mxu1 %v2315_v27  ;;  %v2385_v15 = vld [vmem:[#allocation5 + $0x248] ss:$16 sps:$4 sm:$0xff]   ;;  %v2390_v16 = vld [vmem:[#allocation5 + $0x264] ss:$16 sps:$4 sm:$0xff]   ;;  %v2393_v17 = vld [vmem:[#allocation5 + $0x26c] ss:$16 sps:$4 sm:$0xff]  }
  0x52   :  { %1288 = vmatprep.subr.bf16.mxu0 %v2316_v28  ;;  %1452 = vmatprep.subr.bf16.mxu1 %v2318_v29  ;;  %v2388_v18 = vld [vmem:[#allocation5 + $0x260] ss:$16 sps:$4 sm:$0xff]   ;;  %v2391_v19 = vld [vmem:[#allocation5 + $0x268] ss:$16 sps:$4 sm:$0xff]   ;;  %v2396_v20 = vld [vmem:[#allocation5 + $0x284] ss:$16 sps:$4 sm:$0xff]  }
  0x53   :  { %v2399_v21 = vld [vmem:[#allocation5 + $0x28c] ss:$16 sps:$4 sm:$0xff]   ;;  %v2394_v22 = vld [vmem:[#allocation5 + $0x280] ss:$16 sps:$4 sm:$0xff]   ;;  %v2397_v23 = vld [vmem:[#allocation5 + $0x288] ss:$16 sps:$4 sm:$0xff]  }
  0x54   :  { %v2402_v24 = vld [vmem:[#allocation5 + $0x2a4] ss:$16 sps:$4 sm:$0xff]   ;;  %v2405_v25 = vld [vmem:[#allocation5 + $0x2ac] ss:$16 sps:$4 sm:$0xff]   ;;  %v2400_v26 = vld [vmem:[#allocation5 + $0x2a0] ss:$16 sps:$4 sm:$0xff]  }
  0x55   :  { %1289 = vmatpush1.bf16.msra.mxu0 %v2320_v30  ;;  %1453 = vmatpush1.bf16.msra.mxu1 %v2321_v31  ;;  %v2403_v27 = vld [vmem:[#allocation5 + $0x2a8] ss:$16 sps:$4 sm:$0xff]   ;;  %v2408_v28 = vld [vmem:[#allocation5 + $0x2c4] ss:$16 sps:$4 sm:$0xff]   ;;  %v2411_v29 = vld [vmem:[#allocation5 + $0x2cc] ss:$16 sps:$4 sm:$0xff]  }
  0x56   :  { %1290 = vmatprep.subr.bf16.mxu0 %v2322_v32  ;;  %1454 = vmatprep.subr.bf16.mxu1 %v2324_v33  ;;  %v61_v30 = vld [vmem:[#allocation2 + $0x18] sm:$0xff]  ;;  %v2409_v33 = vld [vmem:[#allocation5 + $0x2c8] ss:$16 sps:$4 sm:$0xff]  }
  0x57   :  { %v2406_v31 = vld [vmem:[#allocation5 + $0x2c0] ss:$16 sps:$4 sm:$0xff]   ;;  %v68_v32 = vpack.c.bf16 %v61_v30, %v61_v30  ;;  %v2432_v46 = vld [vmem:[#allocation5 + $0x344] ss:$16 sps:$4 sm:$0xff]  }
  0x58   :  { %v2430_v48 = vld [vmem:[#allocation5 + $0x340] ss:$16 sps:$4 sm:$0xff]   ;;  %v2462_v2 = vld [vmem:[#allocation5 + $0x3e4] ss:$16 sps:$4 sm:$0xff]  }
  0x59   :  { %1291 = vmatpush1.bf16.msra.mxu0 %v2326_v34  ;;  %1455 = vmatpush1.bf16.msra.mxu1 %v2327_v35  ;;  %v2414_v34 = vld [vmem:[#allocation5 + $0x2e4] ss:$16 sps:$4 sm:$0xff]   ;;  %v2417_v35 = vld [vmem:[#allocation5 + $0x2ec] ss:$16 sps:$4 sm:$0xff]  }
  0x5a   :  { %1292 = vmatprep.subr.bf16.mxu0 %v2328_v36  ;;  %1456 = vmatprep.subr.bf16.mxu1 %v2330_v37  ;;  %v2412_v36 = vld [vmem:[#allocation5 + $0x2e0] ss:$16 sps:$4 sm:$0xff]   ;;  %v2415_v37 = vld [vmem:[#allocation5 + $0x2e8] ss:$16 sps:$4 sm:$0xff]   ;;  %v2498_v30 = vld [vmem:[#allocation5 + $0x4a4] ss:$16 sps:$4 sm:$0xff]  }
  0x5d   :  { %1293 = vmatpush1.bf16.msra.mxu0 %v2332_v38  ;;  %1457 = vmatpush1.bf16.msra.mxu1 %v2333_v39  ;;  %v2420_v38 = vld [vmem:[#allocation5 + $0x304] ss:$16 sps:$4 sm:$0xff]   ;;  %v2423_v39 = vld [vmem:[#allocation5 + $0x30c] ss:$16 sps:$4 sm:$0xff]  }
  0x5e   :  { %1294 = vmatprep.subr.bf16.mxu0 %v2334_v40  ;;  %1458 = vmatprep.subr.bf16.mxu1 %v2336_v41  ;;  %v2418_v40 = vld [vmem:[#allocation5 + $0x300] ss:$16 sps:$4 sm:$0xff]   ;;  %v2421_v41 = vld [vmem:[#allocation5 + $0x308] ss:$16 sps:$4 sm:$0xff]  }
  0x61   :  { %1295 = vmatpush1.bf16.msra.mxu0 %v2338_v42  ;;  %1459 = vmatpush1.bf16.msra.mxu1 %v2339_v43  ;;  %v2426_v42 = vld [vmem:[#allocation5 + $0x324] ss:$16 sps:$4 sm:$0xff]   ;;  %v2429_v43 = vld [vmem:[#allocation5 + $0x32c] ss:$16 sps:$4 sm:$0xff]  }
  0x62   :  { %1296 = vmatprep.subr.bf16.mxu0 %v2340_v44  ;;  %1460 = vmatprep.subr.bf16.mxu1 %v2342_v45  ;;  %v2424_v44 = vld [vmem:[#allocation5 + $0x320] ss:$16 sps:$4 sm:$0xff]   ;;  %v2427_v45 = vld [vmem:[#allocation5 + $0x328] ss:$16 sps:$4 sm:$0xff]  }
  0x65   :  { %1297 = vmatpush1.bf16.msra.mxu0 %v2344_v47  ;;  %1461 = vmatpush1.bf16.msra.mxu1 %v2345_v49  ;;  %v2435_v47 = vld [vmem:[#allocation5 + $0x34c] ss:$16 sps:$4 sm:$0xff]   ;;  %v2433_v49 = vld [vmem:[#allocation5 + $0x348] ss:$16 sps:$4 sm:$0xff]  }
  0x66   :  { %1298 = vmatprep.subr.bf16.mxu0 %v2346_v50  ;;  %1462 = vmatprep.subr.bf16.mxu1 %v2348_v51  ;;  %v2438_v50 = vld [vmem:[#allocation5 + $0x364] ss:$16 sps:$4 sm:$0xff]   ;;  %v2441_v51 = vld [vmem:[#allocation5 + $0x36c] ss:$16 sps:$4 sm:$0xff]  }
  0x69   :  { %1299 = vmatpush1.bf16.msra.mxu0 %v2350_v52  ;;  %1463 = vmatpush1.bf16.msra.mxu1 %v2351_v53  ;;  %v2436_v52 = vld [vmem:[#allocation5 + $0x360] ss:$16 sps:$4 sm:$0xff]   ;;  %v2439_v53 = vld [vmem:[#allocation5 + $0x368] ss:$16 sps:$4 sm:$0xff]  }
  0x6a   :  { %1300 = vmatprep.subr.bf16.mxu0 %v2352_v54  ;;  %1464 = vmatprep.subr.bf16.mxu1 %v2354_v55  ;;  %v2444_v54 = vld [vmem:[#allocation5 + $0x384] ss:$16 sps:$4 sm:$0xff]   ;;  %v2447_v55 = vld [vmem:[#allocation5 + $0x38c] ss:$16 sps:$4 sm:$0xff]  }
  0x6d   :  { %1301 = vmatpush1.bf16.msra.mxu0 %v2356_v56  ;;  %1465 = vmatpush1.bf16.msra.mxu1 %v2357_v57  ;;  %v2442_v56 = vld [vmem:[#allocation5 + $0x380] ss:$16 sps:$4 sm:$0xff]   ;;  %v2445_v57 = vld [vmem:[#allocation5 + $0x388] ss:$16 sps:$4 sm:$0xff]  }
  0x6e   :  { %1302 = vmatprep.subr.bf16.mxu0 %v2358_v58  ;;  %1466 = vmatprep.subr.bf16.mxu1 %v2360_v59  ;;  %v2450_v58 = vld [vmem:[#allocation5 + $0x3a4] ss:$16 sps:$4 sm:$0xff]   ;;  %v2453_v59 = vld [vmem:[#allocation5 + $0x3ac] ss:$16 sps:$4 sm:$0xff]  }
  0x71   :  { %1303 = vmatpush1.bf16.msra.mxu0 %v2362_v60  ;;  %1467 = vmatpush1.bf16.msra.mxu1 %v2363_v61  ;;  %v2448_v60 = vld [vmem:[#allocation5 + $0x3a0] ss:$16 sps:$4 sm:$0xff]   ;;  %v2451_v61 = vld [vmem:[#allocation5 + $0x3a8] ss:$16 sps:$4 sm:$0xff]  }
  0x72   :  { %1304 = vmatprep.subr.bf16.mxu0 %v2364_v62  ;;  %1468 = vmatprep.subr.bf16.mxu1 %v2366_v63  ;;  %v2456_v62 = vld [vmem:[#allocation5 + $0x3c4] ss:$16 sps:$4 sm:$0xff]   ;;  %v2459_v63 = vld [vmem:[#allocation5 + $0x3cc] ss:$16 sps:$4 sm:$0xff]  }
  0x75   :  { %1305 = vmatpush1.bf16.msra.mxu0 %v2368_v0  ;;  %1469 = vmatpush1.bf16.msra.mxu1 %v2369_v1  ;;  %v2454_v0 = vld [vmem:[#allocation5 + $0x3c0] ss:$16 sps:$4 sm:$0xff]   ;;  %v2457_v1 = vld [vmem:[#allocation5 + $0x3c8] ss:$16 sps:$4 sm:$0xff]  }
  0x76   :  { %1315 = vmatprep.subr.bf16.mxu0 %v2372_v3  ;;  %1479 = vmatprep.subr.bf16.mxu1 %v2375_v4  ;;  %v2465_v3 = vld [vmem:[#allocation5 + $0x3ec] ss:$16 sps:$4 sm:$0xff]   ;;  %v2460_v4 = vld [vmem:[#allocation5 + $0x3e0] ss:$16 sps:$4 sm:$0xff]  }
  0x78   :  { %1307 = vmatmul.mubr.bf16.vlgmr.msra.gmra.mrb[0].mxu0 %v65_v5  ;;  %1471 = vmatmul.mubr.bf16.vlgmr.msra.gmra.mrb[0].mxu1 %v65_v5  ;;  %v2463_v5 = vld [vmem:[#allocation5 + $0x3e8] ss:$16 sps:$4 sm:$0xff]  }
  0x79   :  { %1316 = vmatpush1.bf16.msra.mxu0 %v2370_v6  ;;  %1480 = vmatpush1.bf16.msra.mxu1 %v2373_v7  ;;  %v2468_v6 = vld [vmem:[#allocation5 + $0x404] ss:$16 sps:$4 sm:$0xff]   ;;  %v60_v7 = vld [vmem:[#allocation2 + $0x10] sm:$0xff] }
  0x7a   :  { %1317 = vmatprep.subr.bf16.mxu0 %v2378_v8  ;;  %1481 = vmatprep.subr.bf16.mxu1 %v2381_v9  ;;  %v2471_v8 = vld [vmem:[#allocation5 + $0x40c] ss:$16 sps:$4 sm:$0xff]   ;;  %v2466_v9 = vld [vmem:[#allocation5 + $0x400] ss:$16 sps:$4 sm:$0xff]  }
  0x7b   :  { %1347 = vmatprep.mubr.bf16.mxu0 %v68_v32  ;;  %1511 = vmatprep.mubr.bf16.mxu1 %v68_v32  ;;  %v2496_v32 = vld [vmem:[#allocation5 + $0x4a0] ss:$16 sps:$4 sm:$0xff]  }
  0x7d   :  { %1318 = vmatpush1.bf16.msra.mxu0 %v2376_v10  ;;  %1482 = vmatpush1.bf16.msra.mxu1 %v2379_v11  ;;  %v67_v10 = vpack.c.bf16 %v60_v7, %v60_v7  ;;  %v2469_v11 = vld [vmem:[#allocation5 + $0x408] ss:$16 sps:$4 sm:$0xff]   ;;  %v2561_v7 = vld [vmem:[#allocation5 + $0x5ec] ss:$16 sps:$4 sm:$0xff]  }
  0x7e   :  { %1319 = vmatprep.subr.bf16.mxu0 %v2384_v12  ;;  %1483 = vmatprep.subr.bf16.mxu1 %v2387_v13  ;;  %v2474_v12 = vld [vmem:[#allocation5 + $0x424] ss:$16 sps:$4 sm:$0xff]   ;;  %v2477_v13 = vld [vmem:[#allocation5 + $0x42c] ss:$16 sps:$4 sm:$0xff]  }
  0x81   :  { %1320 = vmatpush1.bf16.msra.mxu0 %v2382_v14  ;;  %1484 = vmatpush1.bf16.msra.mxu1 %v2385_v15  ;;  %v63_v14 = vld [vmem:[#allocation2 + $0x28] sm:$0xff] }
  0x82   :  { %1321 = vmatprep.subr.bf16.mxu0 %v2390_v16  ;;  %1485 = vmatprep.subr.bf16.mxu1 %v2393_v17  ;;  %v70_v15 = vpack.c.bf16 %v63_v14, %v63_v14  ;;  %v2472_v16 = vld [vmem:[#allocation5 + $0x420] ss:$16 sps:$4 sm:$0xff]   ;;  %v2475_v17 = vld [vmem:[#allocation5 + $0x428] ss:$16 sps:$4 sm:$0xff]  }
  0x83   :  { %v2562_v14 = vld [vmem:[#allocation5 + $0x600] ss:$16 sps:$4 sm:$0xff]  }
  0x85   :  { %1322 = vmatpush1.bf16.msra.mxu0 %v2388_v18  ;;  %1486 = vmatpush1.bf16.msra.mxu1 %v2391_v19  ;;  %v2480_v18 = vld [vmem:[#allocation5 + $0x444] ss:$16 sps:$4 sm:$0xff]   ;;  %v2483_v19 = vld [vmem:[#allocation5 + $0x44c] ss:$16 sps:$4 sm:$0xff]  }
  0x86   :  { %1323 = vmatprep.subr.bf16.mxu0 %v2396_v20  ;;  %1487 = vmatprep.subr.bf16.mxu1 %v2399_v21  ;;  %v2478_v20 = vld [vmem:[#allocation5 + $0x440] ss:$16 sps:$4 sm:$0xff]   ;;  %v2481_v21 = vld [vmem:[#allocation5 + $0x448] ss:$16 sps:$4 sm:$0xff]  }
  0x89   :  { %1324 = vmatpush1.bf16.msra.mxu0 %v2394_v22  ;;  %1488 = vmatpush1.bf16.msra.mxu1 %v2397_v23  ;;  %v2486_v22 = vld [vmem:[#allocation5 + $0x464] ss:$16 sps:$4 sm:$0xff]   ;;  %v2489_v23 = vld [vmem:[#allocation5 + $0x46c] ss:$16 sps:$4 sm:$0xff]  }
  0x8a   :  { %1325 = vmatprep.subr.bf16.mxu0 %v2402_v24  ;;  %1489 = vmatprep.subr.bf16.mxu1 %v2405_v25  ;;  %v2484_v24 = vld [vmem:[#allocation5 + $0x460] ss:$16 sps:$4 sm:$0xff]   ;;  %v2487_v25 = vld [vmem:[#allocation5 + $0x468] ss:$16 sps:$4 sm:$0xff]  }
  0x8d   :  { %1326 = vmatpush1.bf16.msra.mxu0 %v2400_v26  ;;  %1490 = vmatpush1.bf16.msra.mxu1 %v2403_v27  ;;  %v2492_v26 = vld [vmem:[#allocation5 + $0x484] ss:$16 sps:$4 sm:$0xff]   ;;  %v2495_v27 = vld [vmem:[#allocation5 + $0x48c] ss:$16 sps:$4 sm:$0xff]  }
  0x8e   :  { %1327 = vmatprep.subr.bf16.mxu0 %v2408_v28  ;;  %1491 = vmatprep.subr.bf16.mxu1 %v2411_v29  ;;  %v2490_v28 = vld [vmem:[#allocation5 + $0x480] ss:$16 sps:$4 sm:$0xff]   ;;  %v2493_v29 = vld [vmem:[#allocation5 + $0x488] ss:$16 sps:$4 sm:$0xff]  }
  0x91   :  { %1328 = vmatpush1.bf16.msra.mxu0 %v2406_v31  ;;  %1492 = vmatpush1.bf16.msra.mxu1 %v2409_v33  ;;  %v2501_v31 = vld [vmem:[#allocation5 + $0x4ac] ss:$16 sps:$4 sm:$0xff]   ;;  %v2499_v33 = vld [vmem:[#allocation5 + $0x4a8] ss:$16 sps:$4 sm:$0xff]  }
  0x92   :  { %1329 = vmatprep.subr.bf16.mxu0 %v2414_v34  ;;  %1493 = vmatprep.subr.bf16.mxu1 %v2417_v35  ;;  %v2504_v34 = vld [vmem:[#allocation5 + $0x4c4] ss:$16 sps:$4 sm:$0xff]   ;;  %v2507_v35 = vld [vmem:[#allocation5 + $0x4cc] ss:$16 sps:$4 sm:$0xff]  }
  0x95   :  { %1330 = vmatpush1.bf16.msra.mxu0 %v2412_v36  ;;  %1494 = vmatpush1.bf16.msra.mxu1 %v2415_v37  ;;  %v2502_v36 = vld [vmem:[#allocation5 + $0x4c0] ss:$16 sps:$4 sm:$0xff]   ;;  %v2505_v37 = vld [vmem:[#allocation5 + $0x4c8] ss:$16 sps:$4 sm:$0xff]  }
  0x96   :  { %1331 = vmatprep.subr.bf16.mxu0 %v2420_v38  ;;  %1495 = vmatprep.subr.bf16.mxu1 %v2423_v39  ;;  %v2510_v38 = vld [vmem:[#allocation5 + $0x4e4] ss:$16 sps:$4 sm:$0xff]   ;;  %v2513_v39 = vld [vmem:[#allocation5 + $0x4ec] ss:$16 sps:$4 sm:$0xff]  }
  0x99   :  { %1332 = vmatpush1.bf16.msra.mxu0 %v2418_v40  ;;  %1496 = vmatpush1.bf16.msra.mxu1 %v2421_v41  ;;  %v2508_v40 = vld [vmem:[#allocation5 + $0x4e0] ss:$16 sps:$4 sm:$0xff]   ;;  %v2511_v41 = vld [vmem:[#allocation5 + $0x4e8] ss:$16 sps:$4 sm:$0xff]  }
  0x9a   :  { %1333 = vmatprep.subr.bf16.mxu0 %v2426_v42  ;;  %1497 = vmatprep.subr.bf16.mxu1 %v2429_v43  ;;  %v2516_v42 = vld [vmem:[#allocation5 + $0x504] ss:$16 sps:$4 sm:$0xff]   ;;  %v2519_v43 = vld [vmem:[#allocation5 + $0x50c] ss:$16 sps:$4 sm:$0xff]  }
  0x9d   :  { %1334 = vmatpush1.bf16.msra.mxu0 %v2424_v44  ;;  %1498 = vmatpush1.bf16.msra.mxu1 %v2427_v45  ;;  %v2514_v44 = vld [vmem:[#allocation5 + $0x500] ss:$16 sps:$4 sm:$0xff]   ;;  %v2517_v45 = vld [vmem:[#allocation5 + $0x508] ss:$16 sps:$4 sm:$0xff]  }
  0x9e   :  { %1335 = vmatprep.subr.bf16.mxu0 %v2432_v46  ;;  %1499 = vmatprep.subr.bf16.mxu1 %v2435_v47  ;;  %v2522_v46 = vld [vmem:[#allocation5 + $0x524] ss:$16 sps:$4 sm:$0xff]   ;;  %v2525_v47 = vld [vmem:[#allocation5 + $0x52c] ss:$16 sps:$4 sm:$0xff]  }
  0xa1   :  { %1336 = vmatpush1.bf16.msra.mxu0 %v2430_v48  ;;  %1500 = vmatpush1.bf16.msra.mxu1 %v2433_v49  ;;  %v2520_v48 = vld [vmem:[#allocation5 + $0x520] ss:$16 sps:$4 sm:$0xff]   ;;  %v2523_v49 = vld [vmem:[#allocation5 + $0x528] ss:$16 sps:$4 sm:$0xff]  }
  0xa2   :  { %1337 = vmatprep.subr.bf16.mxu0 %v2438_v50  ;;  %1501 = vmatprep.subr.bf16.mxu1 %v2441_v51  ;;  %v2528_v50 = vld [vmem:[#allocation5 + $0x544] ss:$16 sps:$4 sm:$0xff]   ;;  %v2531_v51 = vld [vmem:[#allocation5 + $0x54c] ss:$16 sps:$4 sm:$0xff]  }
  0xa5   :  { %1338 = vmatpush1.bf16.msra.mxu0 %v2436_v52  ;;  %1502 = vmatpush1.bf16.msra.mxu1 %v2439_v53  ;;  %v2526_v52 = vld [vmem:[#allocation5 + $0x540] ss:$16 sps:$4 sm:$0xff]   ;;  %v2529_v53 = vld [vmem:[#allocation5 + $0x548] ss:$16 sps:$4 sm:$0xff]  }
  0xa6   :  { %1339 = vmatprep.subr.bf16.mxu0 %v2444_v54  ;;  %1503 = vmatprep.subr.bf16.mxu1 %v2447_v55  ;;  %v2534_v54 = vld [vmem:[#allocation5 + $0x564] ss:$16 sps:$4 sm:$0xff]   ;;  %v2537_v55 = vld [vmem:[#allocation5 + $0x56c] ss:$16 sps:$4 sm:$0xff]  }
  0xa9   :  { %1340 = vmatpush1.bf16.msra.mxu0 %v2442_v56  ;;  %1504 = vmatpush1.bf16.msra.mxu1 %v2445_v57  ;;  %v2532_v56 = vld [vmem:[#allocation5 + $0x560] ss:$16 sps:$4 sm:$0xff]   ;;  %v2535_v57 = vld [vmem:[#allocation5 + $0x568] ss:$16 sps:$4 sm:$0xff]  }
  0xaa   :  { %1341 = vmatprep.subr.bf16.mxu0 %v2450_v58  ;;  %1505 = vmatprep.subr.bf16.mxu1 %v2453_v59  ;;  %v2540_v58 = vld [vmem:[#allocation5 + $0x584] ss:$16 sps:$4 sm:$0xff]   ;;  %v2543_v59 = vld [vmem:[#allocation5 + $0x58c] ss:$16 sps:$4 sm:$0xff]  }
  0xad   :  { %1342 = vmatpush1.bf16.msra.mxu0 %v2448_v60  ;;  %1506 = vmatpush1.bf16.msra.mxu1 %v2451_v61  ;;  %v2538_v60 = vld [vmem:[#allocation5 + $0x580] ss:$16 sps:$4 sm:$0xff]   ;;  %v2541_v61 = vld [vmem:[#allocation5 + $0x588] ss:$16 sps:$4 sm:$0xff]  }
  0xae   :  { %1343 = vmatprep.subr.bf16.mxu0 %v2456_v62  ;;  %1507 = vmatprep.subr.bf16.mxu1 %v2459_v63  ;;  %v2546_v62 = vld [vmem:[#allocation5 + $0x5a4] ss:$16 sps:$4 sm:$0xff]   ;;  %v2549_v63 = vld [vmem:[#allocation5 + $0x5ac] ss:$16 sps:$4 sm:$0xff]  }
  0xb1   :  { %1344 = vmatpush1.bf16.msra.mxu0 %v2454_v0  ;;  %1508 = vmatpush1.bf16.msra.mxu1 %v2457_v1  ;;  %v2544_v0 = vld [vmem:[#allocation5 + $0x5a0] ss:$16 sps:$4 sm:$0xff]   ;;  %v2547_v1 = vld [vmem:[#allocation5 + $0x5a8] ss:$16 sps:$4 sm:$0xff]  }
  0xb2   :  { %1345 = vmatprep.subr.bf16.mxu0 %v2462_v2  ;;  %1509 = vmatprep.subr.bf16.mxu1 %v2465_v3  ;;  %v2552_v2 = vld [vmem:[#allocation5 + $0x5c4] ss:$16 sps:$4 sm:$0xff]   ;;  %v2555_v3 = vld [vmem:[#allocation5 + $0x5cc] ss:$16 sps:$4 sm:$0xff]  }
  0xb5   :  { %1346 = vmatpush1.bf16.msra.mxu0 %v2460_v4  ;;  %1510 = vmatpush1.bf16.msra.mxu1 %v2463_v5  ;;  %v2550_v4 = vld [vmem:[#allocation5 + $0x5c0] ss:$16 sps:$4 sm:$0xff]   ;;  %v2553_v5 = vld [vmem:[#allocation5 + $0x5c8] ss:$16 sps:$4 sm:$0xff]  }
  0xb6   :  { %1356 = vmatprep.subr.bf16.mxu0 %v2468_v6  ;;  %1520 = vmatprep.subr.bf16.mxu1 %v2471_v8  ;;  %v2558_v6 = vld [vmem:[#allocation5 + $0x5e4] ss:$16 sps:$4 sm:$0xff]   ;;  %v2556_v8 = vld [vmem:[#allocation5 + $0x5e0] ss:$16 sps:$4 sm:$0xff]  }
  0xb8   :  { %1348 = vmatmul.mubr.bf16.vlgmr.msra.gmra.mrb[0].mxu0 %v67_v10  ;;  %1512 = vmatmul.mubr.bf16.vlgmr.msra.gmra.mrb[0].mxu1 %v67_v10  ;;  %v62_v10 = vld [vmem:[#allocation2 + $0x20] sm:$0xff] }
  0xb9   :  { %1357 = vmatpush1.bf16.msra.mxu0 %v2466_v9  ;;  %1521 = vmatpush1.bf16.msra.mxu1 %v2469_v11  ;;  %v2559_v9 = vld [vmem:[#allocation5 + $0x5e8] ss:$16 sps:$4 sm:$0xff]   ;;  %v2564_v11 = vld [vmem:[#allocation5 + $0x604] ss:$16 sps:$4 sm:$0xff]  }
  0xba   :  { %1358 = vmatprep.subr.bf16.mxu0 %v2474_v12  ;;  %1522 = vmatprep.subr.bf16.mxu1 %v2477_v13  ;;  %v2567_v12 = vld [vmem:[#allocation5 + $0x60c] ss:$16 sps:$4 sm:$0xff]   ;;  %v69_v13 = vpack.c.bf16 %v62_v10, %v62_v10 }
  0xbb   :  { %1388 = vmatprep.mubr.bf16.mxu0 %v70_v15  ;;  %1552 = vmatprep.mubr.bf16.mxu1 %v70_v15  ;;  %v2565_v15 = vld [vmem:[#allocation5 + $0x608] ss:$16 sps:$4 sm:$0xff]  }
  0xbd   :  { %1359 = vmatpush1.bf16.msra.mxu0 %v2472_v16  ;;  %1523 = vmatpush1.bf16.msra.mxu1 %v2475_v17  ;;  %v2568_v16 = vld [vmem:[#allocation7 + $0x40] sm:$0xff]  }
  0xbe   :  { %1360 = vmatprep.subr.bf16.mxu0 %v2480_v18  ;;  %1524 = vmatprep.subr.bf16.mxu1 %v2483_v19  ;;  %v2569_v17 = vld [vmem:[#allocation7 + $0xc0] sm:$0xff]   ;;  %v2701_v18 = vmov 0   ;;  %v64_v19 = vld [vmem:[#allocation2 + $0x30] sm:$0xff] }
  0xc1   :  { %1361 = vmatpush1.bf16.msra.mxu0 %v2478_v20  ;;  %1525 = vmatpush1.bf16.msra.mxu1 %v2481_v21  ;;  %v71_v20 = vpack.c.bf16 %v64_v19, %v64_v19  ;;  %v2570_v21 = vld [vmem:[#allocation7] sm:$0xff]  }
  0xc2   :  { %1362 = vmatprep.subr.bf16.mxu0 %v2486_v22  ;;  %1526 = vmatprep.subr.bf16.mxu1 %v2489_v23  ;;  %v2571_v22 = vld [vmem:[#allocation7 + $0x80] sm:$0xff]   ;;  %v2572_v23 = vld [vmem:[#allocation7 + $0x48] sm:$0xff]  }
  0xc5   :  { %1363 = vmatpush1.bf16.msra.mxu0 %v2484_v24  ;;  %1527 = vmatpush1.bf16.msra.mxu1 %v2487_v25  ;;  %v2573_v24 = vld [vmem:[#allocation7 + $0xc8] sm:$0xff]  }
  0xc6   :  { %1364 = vmatprep.subr.bf16.mxu0 %v2492_v26  ;;  %1528 = vmatprep.subr.bf16.mxu1 %v2495_v27  ;;  %v2574_v25 = vld [vmem:[#allocation7 + $0x8] sm:$0xff]   ;;  %v2576_v27 = vld [vmem:[#allocation7 + $0x50] sm:$0xff]  }
  0xc7   :  { %v2575_v26 = vld [vmem:[#allocation7 + $0x88] sm:$0xff]  }
  0xc9   :  { %1365 = vmatpush1.bf16.msra.mxu0 %v2490_v28  ;;  %1529 = vmatpush1.bf16.msra.mxu1 %v2493_v29  ;;  %v2577_v28 = vld [vmem:[#allocation7 + $0xd0] sm:$0xff]  }
  0xca   :  { %1366 = vmatprep.subr.bf16.mxu0 %v2498_v30  ;;  %1530 = vmatprep.subr.bf16.mxu1 %v2501_v31  ;;  %v2578_v29 = vld [vmem:[#allocation7 + $0x10] sm:$0xff]   ;;  %v2580_v31 = vld [vmem:[#allocation7 + $0x58] sm:$0xff]  }
  0xcb   :  { %v2579_v30 = vld [vmem:[#allocation7 + $0x90] sm:$0xff]  }
  0xcd   :  { %1367 = vmatpush1.bf16.msra.mxu0 %v2496_v32  ;;  %1531 = vmatpush1.bf16.msra.mxu1 %v2499_v33  ;;  %v2581_v32 = vld [vmem:[#allocation7 + $0xd8] sm:$0xff]  }
  0xce   :  { %1368 = vmatprep.subr.bf16.mxu0 %v2504_v34  ;;  %1532 = vmatprep.subr.bf16.mxu1 %v2507_v35  ;;  %v2582_v33 = vld [vmem:[#allocation7 + $0x18] sm:$0xff]   ;;  %v2584_v35 = vld [vmem:[#allocation7 + $0x60] sm:$0xff]  }
  0xcf   :  { %v2583_v34 = vld [vmem:[#allocation7 + $0x98] sm:$0xff]  }
  0xd1   :  { %1369 = vmatpush1.bf16.msra.mxu0 %v2502_v36  ;;  %1533 = vmatpush1.bf16.msra.mxu1 %v2505_v37  ;;  %v2585_v36 = vld [vmem:[#allocation7 + $0xe0] sm:$0xff]  }
  0xd2   :  { %1370 = vmatprep.subr.bf16.mxu0 %v2510_v38  ;;  %1534 = vmatprep.subr.bf16.mxu1 %v2513_v39  ;;  %v2586_v37 = vld [vmem:[#allocation7 + $0x20] sm:$0xff]   ;;  %v2588_v39 = vld [vmem:[#allocation7 + $0x68] sm:$0xff]  }
  0xd3   :  { %v2587_v38 = vld [vmem:[#allocation7 + $0xa0] sm:$0xff]  }
  0xd5   :  { %1371 = vmatpush1.bf16.msra.mxu0 %v2508_v40  ;;  %1535 = vmatpush1.bf16.msra.mxu1 %v2511_v41  ;;  %v2589_v40 = vld [vmem:[#allocation7 + $0xe8] sm:$0xff]  }
  0xd6   :  { %1372 = vmatprep.subr.bf16.mxu0 %v2516_v42  ;;  %1536 = vmatprep.subr.bf16.mxu1 %v2519_v43  ;;  %v2590_v41 = vld [vmem:[#allocation7 + $0x28] sm:$0xff]   ;;  %v2592_v43 = vld [vmem:[#allocation7 + $0x70] sm:$0xff]  }
  0xd7   :  { %v2591_v42 = vld [vmem:[#allocation7 + $0xa8] sm:$0xff]  }
  0xd9   :  { %1373 = vmatpush1.bf16.msra.mxu0 %v2514_v44  ;;  %1537 = vmatpush1.bf16.msra.mxu1 %v2517_v45  ;;  %v2593_v44 = vld [vmem:[#allocation7 + $0xf0] sm:$0xff]  }
  0xda   :  { %1374 = vmatprep.subr.bf16.mxu0 %v2522_v46  ;;  %1538 = vmatprep.subr.bf16.mxu1 %v2525_v47  ;;  %v2594_v45 = vld [vmem:[#allocation7 + $0x30] sm:$0xff]   ;;  %v2596_v47 = vld [vmem:[#allocation7 + $0x78] sm:$0xff]  }
  0xdb   :  { %v2595_v46 = vld [vmem:[#allocation7 + $0xb0] sm:$0xff]  }
  0xdd   :  { %1375 = vmatpush1.bf16.msra.mxu0 %v2520_v48  ;;  %1539 = vmatpush1.bf16.msra.mxu1 %v2523_v49  ;;  %v2597_v48 = vld [vmem:[#allocation7 + $0xf8] sm:$0xff]  }
  0xde   :  { %1376 = vmatprep.subr.bf16.mxu0 %v2528_v50  ;;  %1540 = vmatprep.subr.bf16.mxu1 %v2531_v51  ;;  %v2598_v49 = vld [vmem:[#allocation7 + $0x38] sm:$0xff]   ;;  %v270_v51 = vlaneseq }
  0xdf   :  { %v2599_v50 = vld [vmem:[#allocation7 + $0xb8] sm:$0xff]  }
  0xe1   :  { %1377 = vmatpush1.bf16.msra.mxu0 %v2526_v52  ;;  %1541 = vmatpush1.bf16.msra.mxu1 %v2529_v53  ;;  %v271_v52 = vshrl.u32 %v270_v51, 7 }
  0xe2   :  { %1378 = vmatprep.subr.bf16.mxu0 %v2534_v54  ;;  %1542 = vmatprep.subr.bf16.mxu1 %v2537_v55  ;;  %v268_v55 = vld [vmem:[%s2781_s2] sm:$0xf]  ;;  %s2702_s2 = smov [#allocation8]  }
  0xe3   :  { %v272_v53 = vsub.s32 0, %v271_v52  ;;  %v280_v54 = vsub.s32 2, %v271_v52  ;;  %s1953_s28 = sshll.u32 %s2702_s2, 4  ;;  %s1954_s28 = int_to_ptr.vmem [resolvable:$true] %s1953_s28 }
  0xe4   :  { %s2666_s29 = scalar_lea.vmem %s1954_s28, 128  ;;  %p2671_p11 = scmp.lt.s32.totalorder %s1954_s28, %s1954_s28 }
  0xe5   :  { %1379 = vmatpush1.bf16.msra.mxu0 %v2532_v56  ;;  %1543 = vmatpush1.bf16.msra.mxu1 %v2535_v57  ;;  %v276_v56 = vsub.s32 1, %v271_v52  ;;  %v284_v57 = vsub.s32 3, %v271_v52  ;;  %p2667_p10 = scmp.ne.s32.totalorder %s1954_s28, %s2666_s29  ;;  %p2672_p12 = scmp.lt.s32.totalorder %s2666_s29, %s2666_s29 }
  0xe6   :  { %1380 = vmatprep.subr.bf16.mxu0 %v2540_v58  ;;  %1544 = vmatprep.subr.bf16.mxu1 %v2543_v59  ;;  %v273_v58 = vrot.slane %v268_v55, %v272_v53  ;;  %v281_v59 = vrot.slane %v268_v55, %v280_v54 }
  0xe7   :  { %p2673_p13 = por %p2672_p12, %p2671_p11 }
  0xe9   :  { %1381 = vmatpush1.bf16.msra.mxu0 %v2538_v60  ;;  %1545 = vmatpush1.bf16.msra.mxu1 %v2541_v61  ;;  %v277_v60 = vrot.slane %v268_v55, %v276_v56  ;;  %v285_v61 = vrot.slane %v268_v55, %v284_v57  ;;  %p2674_p0 = pnand %p2673_p13, %p2667_p10 }
  0xea   :  { %1382 = vmatprep.subr.bf16.mxu0 %v2546_v62  ;;  %1546 = vmatprep.subr.bf16.mxu1 %v2549_v63 }
  0xed   :  { %1383 = vmatpush1.bf16.msra.mxu0 %v2544_v0  ;;  %1547 = vmatpush1.bf16.msra.mxu1 %v2547_v1 }
  0xee   :  { %1384 = vmatprep.subr.bf16.mxu0 %v2552_v2  ;;  %1548 = vmatprep.subr.bf16.mxu1 %v2555_v3 }
  0xf1   :  { %1385 = vmatpush1.bf16.msra.mxu0 %v2550_v4  ;;  %1549 = vmatpush1.bf16.msra.mxu1 %v2553_v5 }
  0xf2   :  { %1386 = vmatprep.subr.bf16.mxu0 %v2558_v6  ;;  %1550 = vmatprep.subr.bf16.mxu1 %v2561_v7 }
  0xf5   :  { %1387 = vmatpush1.bf16.msra.mxu0 %v2556_v8  ;;  %1551 = vmatpush1.bf16.msra.mxu1 %v2559_v9 }
  0xf6   :  { %1397 = vmatprep.subr.bf16.mxu0 %v2564_v11  ;;  %1561 = vmatprep.subr.bf16.mxu1 %v2567_v12 }
  0xf8   :  { %1389 = vmatmul.mubr.bf16.vlgmr.msra.gmra.mrb[0].mxu0 %v69_v13  ;;  %1553 = vmatmul.mubr.bf16.vlgmr.msra.gmra.mrb[0].mxu1 %v69_v13 }
  0xf9   :  { %1398 = vmatpush1.bf16.msra.mxu0 %v2562_v14  ;;  %1562 = vmatpush1.bf16.msra.mxu1 %v2565_v15 }
  0xfa   :  { %1429 = vmatprep.mubr.bf16.mxu0 %v2701_v18  ;;  %1593 = vmatprep.mubr.bf16.mxu1 %v2701_v18 }
  0xfb   :  { %2193 = vmatprep.subr.bf16.mxu0 %v2568_v16  ;;  %2215 = vmatprep.subr.bf16.mxu1 %v2569_v17 }
 0x104   :  { %2159 = vmatmul.mubr.msk.bf16.vlgmr.msra.gmra.mrb[0].mxu0 %vm1270_vm0, %v71_v20  ;;  %2160 = vmatmul.mubr.msk.bf16.vlgmr.msra.gmra.mrb[0].mxu1 %vm1270_vm0, %v71_v20 }
 0x105   :  { %2194 = vmatpush3.bf16.msra.mxu0 %v2570_v21  ;;  %2216 = vmatpush3.bf16.msra.mxu1 %v2571_v22 }
 0x106   :  { %2195 = vmatprep.subr.bf16.mxu0 %v2572_v23  ;;  %2217 = vmatprep.subr.bf16.mxu1 %v2573_v24 }
 0x109   :  { %2196 = vmatpush3.bf16.msra.mxu0 %v2574_v25  ;;  %2218 = vmatpush3.bf16.msra.mxu1 %v2575_v26 }
 0x10a   :  { %2197 = vmatprep.subr.bf16.mxu0 %v2576_v27  ;;  %2219 = vmatprep.subr.bf16.mxu1 %v2577_v28 }
 0x10d   :  { %2198 = vmatpush3.bf16.msra.mxu0 %v2578_v29  ;;  %2220 = vmatpush3.bf16.msra.mxu1 %v2579_v30 }
 0x10e   :  { %2199 = vmatprep.subr.bf16.mxu0 %v2580_v31  ;;  %2221 = vmatprep.subr.bf16.mxu1 %v2581_v32 }
 0x111   :  { %2200 = vmatpush3.bf16.msra.mxu0 %v2582_v33  ;;  %2222 = vmatpush3.bf16.msra.mxu1 %v2583_v34 }
 0x112   :  { %2201 = vmatprep.subr.bf16.mxu0 %v2584_v35  ;;  %2223 = vmatprep.subr.bf16.mxu1 %v2585_v36 }
 0x115   :  { %2202 = vmatpush3.bf16.msra.mxu0 %v2586_v37  ;;  %2224 = vmatpush3.bf16.msra.mxu1 %v2587_v38 }
 0x116   :  { %2203 = vmatprep.subr.bf16.mxu0 %v2588_v39  ;;  %2225 = vmatprep.subr.bf16.mxu1 %v2589_v40 }
 0x119   :  { %2204 = vmatpush3.bf16.msra.mxu0 %v2590_v41  ;;  %2226 = vmatpush3.bf16.msra.mxu1 %v2591_v42 }
 0x11a   :  { %2205 = vmatprep.subr.bf16.mxu0 %v2592_v43  ;;  %2227 = vmatprep.subr.bf16.mxu1 %v2593_v44 }
 0x11d   :  { %2206 = vmatpush3.bf16.msra.mxu0 %v2594_v45  ;;  %2228 = vmatpush3.bf16.msra.mxu1 %v2595_v46 }
 0x11e   :  { %2207 = vmatprep.subr.bf16.mxu0 %v2596_v47  ;;  %2229 = vmatprep.subr.bf16.mxu1 %v2597_v48 }
 0x121   :  { %2208 = vmatpush3.bf16.msra.mxu0 %v2598_v49  ;;  %2230 = vmatpush3.bf16.msra.mxu1 %v2599_v50 }
 0x1d7   :  { %v1431_v62 = vpop.f32.mrb[0].mxu0  ;;  %v1595_v63 = vpop.f32.mrb[0].mxu1 }
 0x1d8   :  { %v2237_v0 = vadd.f32 %v1431_v62, %v273_v58  ;;  %v2239_v1 = vadd.f32 %v1595_v63, %v281_v59  ;;  %v1433_v2 = vpop.f32.mrb[1].mxu0  ;;  %v1597_v3 = vpop.f32.mrb[1].mxu1 }
 0x1d9   :  { %v2238_v4 = vadd.f32 %v1433_v2, %v277_v60  ;;  %v2240_v5 = vadd.f32 %v1597_v3, %v285_v61  ;;  %v1435_v6 = vpop.f32.mrb[2].mxu0  ;;  %v1599_v7 = vpop.f32.mrb[2].mxu1 }
 0x1da   :  { %v1602_v8 = vmax.f32 %v2237_v0, 0.0  ;;  %v1604_v9 = vmax.f32 %v2239_v1, 0.0  ;;  %v1436_v10 = vpop.f32.mrb[3].mxu0  ;;  %v1600_v11 = vpop.f32.mrb[3].mxu1 }
 0x1db   :  { %v1603_v12 = vmax.f32 %v2238_v4, 0.0  ;;  %v1605_v13 = vmax.f32 %v2240_v5, 0.0 }
 0x1dc   :  { %v1606_v16 = vpack.c.bf16 %v1602_v8, %v1602_v8  ;;  %v1608_v17 = vpack.c.bf16 %v1604_v9, %v1604_v9 }
 0x1dd   :  { %v1607_v14 = vpack.c.bf16 %v1603_v12, %v1603_v12  ;;  %v1609_v15 = vpack.c.bf16 %v1605_v13, %v1605_v13 }
 0x1df   :  { %1898 = vmatprep.mubr.bf16.mxu0 %v1607_v14  ;;  %1938 = vmatprep.mubr.bf16.mxu1 %v1609_v15 }
 0x1e0   :  { %1899 = vmatmul.mubr.bf16.vlgmr.msra.gmra.mrb[4].mxu0 %v1606_v16  ;;  %1939 = vmatmul.mubr.bf16.vlgmr.msra.gmra.mrb[4].mxu1 %v1608_v17 }
 0x2b3   :  { %v2209_v18 = vpop.f32.mrb[4].mxu0  ;;  %v2231_v19 = vpop.f32.mrb[4].mxu1 }
 0x2b4   :  { %v2210_v20 = vpop.f32.mrb[5].mxu0  ;;  %v2232_v21 = vpop.f32.mrb[5].mxu1 }
 0x2b5   :  { %v2211_v22 = vadd.f32 %v2210_v20, %v2209_v18  ;;  %v2233_v23 = vadd.f32 %v2232_v21, %v2231_v19  ;;  %v2212_v24 = vpop.f32.mrb[6].mxu0  ;;  %v2234_v25 = vpop.f32.mrb[6].mxu1 }
 0x2b6   :  { %v2213_v26 = vpop.f32.mrb[7].mxu0  ;;  %v2235_v27 = vpop.f32.mrb[7].mxu1 }
 0x2b7   :  { %v1941_v28 = vadd.f32 %v2233_v23, %v2211_v22 }
 0x2b9   :  { %1946 = vst [vmem:[#allocation8] sm:$0xff] %v1941_v28 }
 0x2ba   :  { %2677 = shalt.err (!%p2674_p0)
}
 0x2bb   :  { %s2678_s6 = scalar_lea.hbm %s2783_s4, 128 }
 0x2bc   :  { %p2679_p1 = scmp.ne.s32.totalorder %s2783_s4, %s2678_s6  ;;  %p2682_p2 = scmp.lt.u32.totalorder %s2678_s6, %s2783_s4 }
 0x2be   :  { %p2684_p3 = pnand %p2682_p2, %p2679_p1 }
 0x2c0   :  { %2687 = shalt.err (!%p2684_p3)
}
 0x2c1   :  { %1956 = dma.vmem_to_hbm [thread:$0]  %s1954_s28, 128, %s2783_s4, [#allocation4]  }
 0x2c2   :  { %2692 = dma.done.wait [#allocation4], 128  }
 0x2c3   :  { %2693 = vsyncadd [#allocation4], 4294967168 }
 0x2c4   :  { %1960 = vsyncpa [#allocation3], 1 }
 0x2c5   :  { %1961 = vsyncpa [#allocation6], 1 }
 0x2c6   :  { %1962 = vsyncpa [#allocation4], 1 }

</bundles_post_ra>
